<compile_context>
chip_gen: v6e
topology: v6e:2x2x1
jax: 0.10.0
libtpu: 0.0.40
codegen_flags: <defaults>
</compile_context>

<pallas_src>
import jax
import jax.numpy as jnp
import numpy as np
from jax import lax
from jax.experimental import pallas as pl
from jax.experimental.pallas import tpu as pltpu


def ccam_kernel(x_ref, y_ref, gamma_ref, out_ref):
    # x_ref / y_ref / out_ref: (1, C, N) VMEM blocks; gamma_ref: (1,) in SMEM.
    x = x_ref[0]                                   # (C, N)
    y = y_ref[0]                                   # (C, N)

    # energy[i, j] = sum_n x[i, n] * y[j, n]   (== x @ y^T, no transpose copy)
    energy = lax.dot_general(
        x, y, (((1,), (1,)), ((), ())),
        preferred_element_type=jnp.float32)        # (C, C)

    # energy_new = rowmax(energy) - energy, then softmax over the last dim
    # (matches the PyTorch forward; shift by its own rowmax for stability).
    e_max = jnp.max(energy, axis=-1, keepdims=True)
    energy_new = e_max - energy
    s_max = jnp.max(energy_new, axis=-1, keepdims=True)
    p = jnp.exp(energy_new - s_max)                # (C, C)
    denom = jnp.sum(p, axis=-1, keepdims=True)     # (C, 1)
    attn = p * pl.reciprocal(denom, approx=False)  # one reciprocal of (C,1),
                                                   # then cheap VALU multiply

    # out[i, n] = sum_j attn[i, j] * y[j, n]
    out = jnp.dot(attn, y, preferred_element_type=jnp.float32)   # (C, N)

    gamma = gamma_ref[0]
    out_ref[0] = (gamma * out + x).astype(out_ref.dtype)


def ccam_forward(x, y, gamma):
    B, C, H, W = x.shape
    N = H * W

    xr = x.reshape(B, C, N)                        # native dtype, no astype
    yr = y.reshape(B, C, N)
    g = jnp.asarray(gamma, jnp.float32).reshape(1,)

    blk = pl.BlockSpec((1, C, N), lambda b: (b, 0, 0))

    # Resident VMEM per step: double-buffered x, y, out blocks + small (C,C)
    # intermediates.  Size the scoped limit explicitly (capped well below the
    # v7x 64 MiB physical ceiling).
    itemsize = jnp.dtype(xr.dtype).itemsize
    needed = 6 * C * N * itemsize + 8 * C * C * 4 + (2 << 20)
    vmem_limit = int(min(max(needed, 16 << 20), 48 << 20))

    out = pl.pallas_call(
        ccam_kernel,
        out_shape=jax.ShapeDtypeStruct((B, C, N), xr.dtype),
        grid=(B,),
        in_specs=[
            blk,                                                   # x
            blk,                                                   # y
            pl.BlockSpec(memory_space=pltpu.MemorySpace.SMEM),     # gamma
        ],
        out_specs=blk,
        compiler_params=pltpu.CompilerParams(
            dimension_semantics=("parallel",),
            vmem_limit_bytes=vmem_limit),
    )(xr, yr, g)

    return out.reshape(B, C, H, W)


def ccam_reference(x, y, gamma):
    # Pure-JAX reference matching the PyTorch CCAM_Module.forward.
    B, C, H, W = x.shape
    N = H * W
    q = x.reshape(B, C, N)
    k = y.reshape(B, C, N)
    energy = jnp.einsum('bcn,bdn->bcd', q, k)                     # (B, C, C)
    energy_new = jnp.max(energy, axis=-1, keepdims=True) - energy
    attn = jax.nn.softmax(energy_new, axis=-1)
    out = jnp.einsum('bcd,bdn->bcn', attn, k)                     # (B, C, N)
    out = gamma * out + q
    return out.reshape(B, C, H, W)


if __name__ == "__main__":
    # Small, lane-aligned shapes: N = H*W = 256 (multiple of 128), C multiple of 8.
    B, C, H, W = 2, 32, 16, 16

    key = jax.random.PRNGKey(0)
    kx, ky = jax.random.split(key, 2)

    x = jax.random.normal(kx, (B, C, H, W), jnp.float32)
    y = jax.random.normal(ky, (B, C, H, W), jnp.float32)

    # PyTorch inits gamma to 0 (output would equal x); use a nonzero
    # deterministic value so the attention path is actually exercised.
    gamma = 0.5

    out = ccam_forward(x, y, gamma)
    out = jax.block_until_ready(out)

    ref = ccam_reference(x, y, gamma)
    np.testing.assert_allclose(np.asarray(out), np.asarray(ref),
                               rtol=1e-4, atol=1e-4)
    print("KERNEL_OK")
</pallas_src>

<mosaic_0001>
module attributes {stable_mosaic.version = 11 : i64} {
  func.func @ccam_kernel(%arg0: i32, %arg1: memref<1x32x256xf32, #tpu.memory_space<vmem>>, %arg2: memref<1x32x256xf32, #tpu.memory_space<vmem>>, %arg3: memref<1xf32, #tpu.memory_space<smem>>, %arg4: memref<1x32x256xf32, #tpu.memory_space<vmem>>) attributes {dimension_semantics = [#tpu.dimension_semantics<parallel>], iteration_bounds = array<i64: 2>, scalar_prefetch = 0 : i64, scratch_operands = 0 : i64, tpu.core_type = #tpu.core_type<tc>, window_params = [{transform_indices = @transform_0, window_bounds = array<i64: 1, 32, 256>}, {transform_indices = @transform_1, window_bounds = array<i64: 1, 32, 256>}, {transform_indices = @transform_2, window_bounds = array<i64: 1>}, {transform_indices = @transform_3, window_bounds = array<i64: 1, 32, 256>}]} {
    %c0 = arith.constant 0 : index
    %c0_0 = arith.constant 0 : index
    %c0_1 = arith.constant 0 : index
    %0 = vector.load %arg1[%c0, %c0_0, %c0_1] : memref<1x32x256xf32, #tpu.memory_space<vmem>>, vector<1x32x256xf32>
    %1 = vector.shape_cast %0 : vector<1x32x256xf32> to vector<32x256xf32>
    %c0_2 = arith.constant 0 : index
    %c0_3 = arith.constant 0 : index
    %c0_4 = arith.constant 0 : index
    %2 = vector.load %arg2[%c0_2, %c0_3, %c0_4] : memref<1x32x256xf32, #tpu.memory_space<vmem>>, vector<1x32x256xf32>
    %3 = vector.shape_cast %2 : vector<1x32x256xf32> to vector<32x256xf32>
    %cst = arith.constant dense<0.000000e+00> : vector<32x32xf32>
    %4 = tpu.matmul %1, %3, %cst {dimension_numbers = #tpu.dot_dimension_numbers<[1], [1], [0], [0], [0, 0, 1, 0], [], []>} : vector<32x256xf32>, vector<32x256xf32>, vector<32x32xf32> -> vector<32x32xf32>
    %cst_5 = arith.constant dense<0xFF800000> : vector<32xf32>
    %5 = vector.multi_reduction <maximumf>, %4, %cst_5 [1] : vector<32x32xf32> to vector<32xf32>
    %6 = vector.shape_cast %5 : vector<32xf32> to vector<32x1xf32>
    %7 = vector.broadcast %6 : vector<32x1xf32> to vector<32x32xf32>
    %8 = arith.subf %7, %4 : vector<32x32xf32>
    %cst_6 = arith.constant dense<0xFF800000> : vector<32xf32>
    %9 = vector.multi_reduction <maximumf>, %8, %cst_6 [1] : vector<32x32xf32> to vector<32xf32>
    %10 = vector.shape_cast %9 : vector<32xf32> to vector<32x1xf32>
    %11 = vector.broadcast %10 : vector<32x1xf32> to vector<32x32xf32>
    %12 = arith.subf %8, %11 : vector<32x32xf32>
    %13 = math.exp %12 : vector<32x32xf32>
    %cst_7 = arith.constant dense<0.000000e+00> : vector<32xf32>
    %14 = vector.multi_reduction <add>, %13, %cst_7 [1] : vector<32x32xf32> to vector<32xf32>
    %15 = vector.shape_cast %14 : vector<32xf32> to vector<32x1xf32>
    %16 = tpu.reciprocal %15 : vector<32x1xf32> -> vector<32x1xf32>
    %17 = vector.broadcast %16 : vector<32x1xf32> to vector<32x32xf32>
    %18 = arith.mulf %13, %17 : vector<32x32xf32>
    %cst_8 = arith.constant dense<0.000000e+00> : vector<32x256xf32>
    %19 = tpu.matmul %18, %3, %cst_8 {dimension_numbers = #tpu.dot_dimension_numbers<[1], [0], [0], [1], [0, 0, 1, 1], [], []>} : vector<32x32xf32>, vector<32x256xf32>, vector<32x256xf32> -> vector<32x256xf32>
    %c0_9 = arith.constant 0 : index
    %20 = memref.load %arg3[%c0_9] : memref<1xf32, #tpu.memory_space<smem>>
    %21 = vector.broadcast %20 : f32 to vector<32x256xf32>
    %22 = arith.mulf %21, %19 : vector<32x256xf32>
    %23 = arith.addf %22, %1 : vector<32x256xf32>
    %c0_10 = arith.constant 0 : index
    %c0_11 = arith.constant 0 : index
    %c0_12 = arith.constant 0 : index
    %24 = vector.load %arg4[%c0_10, %c0_11, %c0_12] : memref<1x32x256xf32, #tpu.memory_space<vmem>>, vector<1x32x256xf32>
    %25 = vector.shape_cast %24 : vector<1x32x256xf32> to vector<32x256xf32>
    %26 = vector.shape_cast %23 : vector<32x256xf32> to vector<1x32x256xf32>
    tpu.vector_store %arg4[%c0_10, %c0_11, %c0_12], %26 {strides = array<i32>} : memref<1x32x256xf32, #tpu.memory_space<vmem>>, vector<1x32x256xf32>,
    return
  }
  func.func @transform_0(%arg0: i32) -> (i32, i32, i32) {
    %c0_i32 = arith.constant 0 : i32
    %c0_i32_0 = arith.constant 0 : i32
    %c0_i32_1 = arith.constant 0 : i32
    return %arg0, %c0_i32, %c0_i32_0 : i32, i32, i32
  }
  func.func @transform_1(%arg0: i32) -> (i32, i32, i32) {
    %c0_i32 = arith.constant 0 : i32
    %c0_i32_0 = arith.constant 0 : i32
    %c0_i32_1 = arith.constant 0 : i32
    return %arg0, %c0_i32, %c0_i32_0 : i32, i32, i32
  }
  func.func @transform_2(%arg0: i32) -> i32 {
    %c0_i32 = arith.constant 0 : i32
    %c0_i32_0 = arith.constant 0 : i32
    return %c0_i32 : i32
  }
  func.func @transform_3(%arg0: i32) -> (i32, i32, i32) {
    %c0_i32 = arith.constant 0 : i32
    %c0_i32_0 = arith.constant 0 : i32
    %c0_i32_1 = arith.constant 0 : i32
    return %arg0, %c0_i32, %c0_i32_0 : i32, i32, i32
  }
}

</mosaic_0001>

<bundles_post_ra>
// kernel: tpu_custom_call.1
= control target key start
LH: loop header
LB: loop body
LE: loop exit
PB: predicated region body
PF: predicated region fallthrough
CT: control target
= control target key end

     0   :  { %s1164_s0 = inlined_call_operand.hbm [shape: f32[2,32,256], index: 0, kind: input, shape index: {}]   ;;  %s1165_s1 = inlined_call_operand.hbm [shape: f32[2,32,256], index: 1, kind: input, shape index: {}]   ;;  %s1166_s2 = inlined_call_operand.<no memory space> [shape: f32[1], index: 2, kind: input, shape index: {}]   ;;  %s1167_s3 = inlined_call_operand.hbm [shape: f32[2,32,256], index: 3, kind: output, shape index: {}]  }
   0x1   :  { %8 = sst [smem:[#allocation2]] %s1166_s2 }
   0x2   :  { %9 = vsyncpa [#allocation4], 0 }
   0x3   :  { %11 = vsyncpa [#allocation4 + $0x1], 0 }
   0x4   :  { %12 = vsyncpa [#allocation7], 0 }
   0x5   :  { %14 = vsyncpa [#allocation7 + $0x1], 0 }
   0x6   :  { %15 = vsyncpa [#allocation5], 0 }
   0x7   :  { %17 = vsyncpa [#allocation5 + $0x1], 0  ;;  %s883_s14 = smov 0   ;;  %s885_s15 = smov 0  }
   0x8   :  { %s887_s16 = smov 0   ;;  %s889_s17 = smov 0  }
   0x9 LB: > { %s904_s2 = sadd.s32 4294967295, %s850_s17   ;;  %s629_s18 = sadd.s32 4294967294, %s850_s17   ;;  %s850_s17 = sphi %s889_s17, %s1183_s17   ;;  %s846_s16 = sphi %s887_s16, %s1182_s16   ;;  %s842_s15 = sphi %s885_s15, %s1181_s15   ;;  %s838_s14 = sphi %s883_s14, %s1180_s14  }
   0xa   : > { %s908_s19 = sadd.s32 1, %s850_s17   ;;  %s30_s20 = sadd.s32 1, %s846_s16 }
   0xb   : > { %s27_s21 = ssub.s32 %s850_s17, %s908_s19  ;;  %p37_p0 = scmp.ne.s32.totalorder %s846_s16, %s842_s15 }
   0xc   : > { %p28_p1 = scmp.eq.s32.totalorder %s27_s21, 0  ;;  %p38_p2 = scmp.eq.s32.totalorder %s850_s17, 0 }
   0xd   : > { %p43_p3 = scmp.ne.s32.totalorder %s842_s15, %s838_s14  ;;  %p44_p4 = scmp.eq.s32.totalorder %s904_s2, 0 }
   0xe   : > { %s920_s22 = scalar_select %p28_p1, %s846_s16, %s30_s20  }
   0xf   : > { %p922_p5 = por %p38_p2, %p37_p0  ;;  %p926_p6 = por %p44_p4, %p43_p3 }
  0x10   : > { %p114_p7 = scmp.eq.s32.totalorder %s904_s2, 1  ;;  %p120_p8 = scmp.eq.s32.totalorder %s629_s18, 1 }
  0x11   : > { %s1171_s24 = scalar_select %p926_p6, 1, 0 }
  0x12   : > { %p671_p10 = scmp.lt.s32.totalorder %s850_s17, 2  ;;  %p933_p11 = por %p114_p7, %p37_p0 }
  0x13   : > { %p937_p12 = por %p120_p8, %p43_p3  ;;  %s942_s27 = sand.u32 1, %s846_s16  }
  0x14   : > { %s1172_s25 = scalar_select %p933_p11, 1, 0 }
  0x15   : > { %s1173_s26 = scalar_select %p937_p12, 1, 0 }
  0x16   : > { %s651_s28 = sshll.u32 %s850_s17, 10  ;;  %s632_s29 = sshll.u32 %s942_s27, 6 }
  0x17   : > { %s951_s5 = scalar_lea.hbm %s1164_s0, %s651_s28  ;;  %s147_s6 = scalar_lea.vmem [#allocation3], %s632_s29 }
  0x18   : > { %s154_s7 = sshll.u32 %s147_s6, 4  ;;  %p957_p13 = pnand %p671_p10, %p922_p5  ;;  %s961_s7 = int_to_ptr.vmem [resolvable:$true] %s154_s7 }
  0x19   : > { %s144_s9 = scalar_lea.sflag [#allocation4], %s942_s27  ;;  %s726_s10 = scalar_lea.hbm %s951_s5, 1024 }
  0x1a   : > { %p727_p0 = scmp.ne.s32.totalorder %s951_s5, %s726_s10  ;;  %p728_p1 = pneg %p957_p13 }
  0x1b   : > { %s731_s13 = scalar_lea.hbm %s1164_s0, 2048  ;;  %p732_p4 = scmp.lt.s32.totalorder %s951_s5, %s1164_s0 }
  0x1c   : > { %p729_p2 = pnand %p728_p1, %p727_p0  ;;  %p733_p5 = scmp.lt.s32.totalorder %s731_s13, %s726_s10 }
  0x1e   : > { %p730_p3 = pneg %p729_p2  ;;  %p734_p7 = por %p733_p5, %p732_p4 }
  0x20   : > { %p735_p8 = pnand %p734_p7, %p730_p3 }
  0x22   : > { %738 = shalt.err (!%p735_p8)
}
  0x23   : > { %s739_s21 = scalar_lea.vmem %s961_s7, 1024  ;;  %s852_s23 = smov [#allocation3]  }
  0x24   : > { %p740_p10 = scmp.ne.s32.totalorder %s961_s7, %s739_s21  ;;  %s744_s30 = sshll.u32 %s852_s23, 4  ;;  %s745_s30 = int_to_ptr.vmem [resolvable:$false] %s744_s30 }
  0x25   : > { %s746_s4 = scalar_lea.vmem %s745_s30, 2048  ;;  %p747_p9 = scmp.lt.s32.totalorder %s961_s7, %s745_s30 }
  0x26   : > { %p742_p0 = pnand %p740_p10, %p728_p1  ;;  %p748_p12 = scmp.lt.s32.totalorder %s746_s4, %s739_s21 }
  0x28   : > { %p743_p2 = pneg %p742_p0  ;;  %p749_p11 = por %p748_p12, %p747_p9 }
  0x2a   : > { %p750_p4 = pnand %p749_p11, %p743_p2 }
  0x2c   : > { %753 = shalt.err (!%p750_p4)
}
  0x2d   : > { %s853_s6 = smov 256   ;;  %s854_s10 = smov 16  }
  0x2e   : > { %663 = dma.hbm_to_vmem [thread:$0]  (!%p957_p13), %s951_s5, 1024, %s961_s7, %s144_s9, %s853_s6, %s853_s6, %s854_s10  }
  0x2f   : > { %p638_p9 = scmp.ge.s32.totalorder %s850_s17, 1  ;;  %p183_p11 = scmp.lt.s32.totalorder %s850_s17, 3 }
  0x30   : > { %s1004_s18 = scalar_lea.hbm %s1165_s1, %s651_s28  ;;  %s168_s20 = scalar_lea.vmem [#allocation6], %s632_s29 }
  0x31   : > { %p995_p12 = pnand %p638_p9, %p183_p11  ;;  %s175_s21 = sshll.u32 %s168_s20, 4  ;;  %s1008_s21 = int_to_ptr.vmem [resolvable:$true] %s175_s21 }
  0x32   : > { %s165_s5 = scalar_lea.sflag [#allocation7], %s942_s27  ;;  %s754_s7 = scalar_lea.hbm %s1004_s18, 1024 }
  0x33   : > { %p755_p3 = scmp.ne.s32.totalorder %s1004_s18, %s754_s7  ;;  %s759_s28 = scalar_lea.hbm %s1165_s1, 2048 }
  0x34   : > { %p760_p8 = scmp.lt.s32.totalorder %s1004_s18, %s1165_s1  ;;  %p761_p10 = scmp.lt.s32.totalorder %s759_s28, %s754_s7 }
  0x35   : > { %p757_p5 = pnand %p755_p3, %p728_p1 }
  0x36   : > { %p762_p0 = por %p761_p10, %p760_p8 }
  0x37   : > { %p758_p7 = pneg %p757_p5 }
  0x39   : > { %p763_p2 = pnand %p762_p0, %p758_p7 }
  0x3b   : > { %766 = shalt.err (!%p763_p2)
}
  0x3c   : > { %s767_s27 = scalar_lea.vmem %s1008_s21, 1024  ;;  %s855_s29 = smov [#allocation6]  }
  0x3d   : > { %p768_p4 = scmp.ne.s32.totalorder %s1008_s21, %s767_s27  ;;  %s772_s12 = sshll.u32 %s855_s29, 4  ;;  %s773_s12 = int_to_ptr.vmem [resolvable:$false] %s772_s12 }
  0x3e   : > { %s774_s13 = scalar_lea.vmem %s773_s12, 2048  ;;  %p775_p3 = scmp.lt.s32.totalorder %s1008_s21, %s773_s12 }
  0x3f   : > { %p770_p9 = pnand %p768_p4, %p728_p1  ;;  %p776_p5 = scmp.lt.s32.totalorder %s774_s13, %s767_s27 }
  0x41   : > { %p771_p11 = pneg %p770_p9  ;;  %p777_p6 = por %p776_p5, %p775_p3 }
  0x43   : > { %p778_p8 = pnand %p777_p6, %p771_p11 }
  0x45   : > { %781 = shalt.err (!%p778_p8)
}
  0x46   : > { %666 = dma.hbm_to_vmem [thread:$0]  (!%p957_p13), %s1004_s18, 1024, %s1008_s21, %s165_s5, %s853_s6, %s853_s6, %s854_s10  }
  0x47   : > { %187 = sbr.rel (%p995_p12) target bundleno = 967 (0x3c7), region = 32  ;;  %s1039_s20 = sand.u32 (!%p995_p12), 1, %s842_s15  }
  0x48   : > { %s1042_s7 = sshll.u32 (!%p995_p12), %s1039_s20, 6  ;;  %s190_s9 = scalar_lea.sflag (!%p995_p12), [#allocation4], %s1039_s20 }
  0x49   : > { %s1046_s8 = scalar_lea.vmem (!%p995_p12), [#allocation3], %s1042_s7  ;;  %p1176_p6 = scmp.ne.s32.totalorder (!%p995_p12), %s1171_s24, 0 }
  0x4c   : > { %825 = dma.done.wait (%p1176_p6), %s190_s9, 1024  }
  0x4d   : > { %827 = vsyncadd (%p1176_p6), %s190_s9, 4294966272  ;;  %s199_s6 = scalar_lea.sflag [#allocation7], %s1039_s20  ;;  %s202_s10 = scalar_lea.vmem [#allocation6], %s1042_s7 }
  0x4e   : > { %829 = dma.done.wait (%p1176_p6), %s199_s6, 1024  }
  0x4f   : > { %831 = vsyncadd (%p1176_p6), %s199_s6, 4294966272  ;;  %v245_v0 = vld [vmem:[%s202_s10 + $0x38] sm:$0xff]  ;;  %v244_v1 = vld [vmem:[%s202_s10 + $0x30] sm:$0xff]  ;;  %vm331_vm0 = vcmask 261120   ;;  %v856_v60 = vmov 0.0   ;;  %s493_s24 = sld [smem:[#allocation2]] }
  0x50   : > { %v243_v2 = vld [vmem:[%s202_s10 + $0x28] sm:$0xff]  ;;  %270 = vmatprep.subr.mxu0 %v245_v0  ;;  %428 = vmatprep.subr.mxu1 %v245_v0  ;;  %v242_v4 = vld [vmem:[%s202_s10 + $0x20] sm:$0xff]  ;;  %v241_v5 = vld [vmem:[%s202_s10 + $0x18] sm:$0xff]  ;;  %s229_s11 = scalar_lea.vmem [#allocation8], %s1042_s7  ;;  %s653_s21 = sshll.u32 %s904_s2, 10 }
  0x51   : > { %271 = vmatpush1.xpose.msra.mxu0 %v244_v1  ;;  %v1059_v3 = vld [vmem:[%s1046_s8 + $0x8] sm:$0xff]  ;;  %429 = vmatpush1.msra.mxu1 %v244_v1  ;;  %v240_v6 = vld [vmem:[%s202_s10 + $0x10] sm:$0xff]  ;;  %v238_v8 = vld [vmem:[%s202_s10] sm:$0xff]  ;;  %s533_s18 = sshll.u32 %s229_s11, 4  ;;  %s1120_s28 = scalar_lea.hbm %s1167_s3, %s653_s21  ;;  %s1114_s18 = int_to_ptr.vmem [resolvable:$true] %s533_s18 }
  0x52   : > { %272 = vmatprep.subr.mxu0 %v243_v2  ;;  %310 = vmatprep.mubr.f32.mxu0 %v1059_v3  ;;  %v239_v7 = vld [vmem:[%s202_s10 + $0x8] sm:$0xff]  ;;  %v1063_v9 = vld [vmem:[%s1046_s8] sm:$0xff]  ;;  %v1066_v10 = vld [vmem:[%s1046_s8 + $0x18] sm:$0xff]  ;;  %s520_s2 = scalar_lea.sflag [#allocation5], %s1039_s20  ;;  %s782_s30 = scalar_lea.vmem %s1114_s18, 1024 }
  0x53   : > { %430 = vmatprep.subr.mxu1 %v243_v2  ;;  %v1071_v11 = vld [vmem:[%s1046_s8 + $0x10] sm:$0xff]  ;;  %v1074_v12 = vld [vmem:[%s1046_s8 + $0x28] sm:$0xff]  ;;  %v1079_v13 = vld [vmem:[%s1046_s8 + $0x20] sm:$0xff]  ;;  %468 = vmatprep.mubr.f32.mxu1 %v856_v60  ;;  %p783_p13 = scmp.ne.s32.totalorder %s1114_s18, %s782_s30  ;;  %p1177_p1 = scmp.ne.s32.totalorder %s1172_s25, 0 }
  0x54   : > { %431 = vmatpush1.msra.mxu1 %v242_v4  ;;  %v1082_v14 = vld [vmem:[%s1046_s8 + $0x38] sm:$0xff]  ;;  %v1087_v15 = vld [vmem:[%s1046_s8 + $0x30] sm:$0xff]  ;;  %s857_s4 = smov [#allocation8]  }
  0x55   : > { %273 = vmatpush1.xpose.msra.mxu0 %v242_v4  ;;  %432 = vmatprep.subr.mxu1 %v241_v5  ;;  %p784_p12 = pnand %p783_p13, %p1177_p1  ;;  %s786_s27 = sshll.u32 %s857_s4, 4  ;;  %s787_s27 = int_to_ptr.vmem [resolvable:$false] %s786_s27 }
  0x56   : > { %274 = vmatprep.subr.mxu0 %v241_v5  ;;  %433 = vmatpush1.msra.mxu1 %v240_v6  ;;  %s788_s29 = scalar_lea.vmem %s787_s27, 2048  ;;  %p789_p10 = scmp.lt.s32.totalorder %s1114_s18, %s787_s27 }
  0x57   : > { %434 = vmatprep.subr.mxu1 %v239_v7  ;;  %p785_p7 = pneg %p784_p12  ;;  %p790_p0 = scmp.lt.s32.totalorder %s788_s29, %s782_s30 }
  0x58   : > { %435 = vmatpush1.msra.mxu1 %v238_v8 }
  0x59   : > { %275 = vmatpush1.xpose.msra.mxu0 %v240_v6  ;;  %p791_p2 = por %p790_p0, %p789_p10 }
  0x5a   : > { %276 = vmatprep.subr.mxu0 %v239_v7 }
  0x5b   : > { %p792_p4 = pnand %p791_p2, %p785_p7 }
  0x5d   : > { %277 = vmatpush1.xpose.msra.mxu0 %v238_v8 }
  0x60   : > { %311 = vmatmul.mubr.f32.vlgmr.msra.gmra.mxu0 %v1063_v9 }
  0x61   : > { %315 = vmatprep.mubr.f32.mxu0 %v1066_v10 }
  0x64   : > { %316 = vmatmul.mubr.f32.gmra.mxu0 %v1071_v11 }
  0x65   : > { %320 = vmatprep.mubr.f32.mxu0 %v1074_v12 }
  0x68   : > { %321 = vmatmul.mubr.f32.gmra.mxu0 %v1079_v13 }
  0x69   : > { %325 = vmatprep.mubr.f32.mxu0 %v1082_v14 }
  0x6c   : > { %326 = vmatmul.mubr.f32.gmra.mxu0 %v1087_v15 }
 0x120   : > { %v312_v16 = vpop.f32.mrf.mxu0 }
 0x121   : > { %v332_v17 = vsel %vm331_vm0, %v312_v16, -inf }
 0x122   : > { %333 = vmax.xlane.f32.xlu0 %v332_v17  ;;  %v314_v18 = vpop.f32.mrf.mxu0  ;;  %v494_v17 = vstv %s493_s24 }
 0x124   : > { %v317_v19 = vpop.f32.mrf.mxu0 }
 0x125   : > { %v335_v20 = vsel %vm331_vm0, %v317_v19, -inf }
 0x126   : > { %336 = vmax.xlane.f32.xlu0 %v335_v20  ;;  %v319_v21 = vpop.f32.mrf.mxu0 }
 0x128   : > { %v322_v22 = vpop.f32.mrf.mxu0 }
 0x129   : > { %v338_v23 = vsel %vm331_vm0, %v322_v22, -inf }
 0x12a   : > { %339 = vmax.xlane.f32.xlu1 %v338_v23  ;;  %v324_v24 = vpop.f32.mrf.mxu0 }
 0x12c   : > { %v327_v25 = vpop.f32.mrf.mxu0 }
 0x12d   : > { %v341_v26 = vsel %vm331_vm0, %v327_v25, -inf }
 0x12e   : > { %342 = vmax.xlane.f32.xlu1 %v341_v26  ;;  %v329_v27 = vpop.f32.mrf.mxu0 }
 0x1ab   : > { %v334_v28 = vpop.xlane.xlu0 %333 }
 0x1ac   : > { %v344_v29 = vsub.f32 %v334_v28, %v312_v16 }
 0x1ae   : > { %v348_v30 = vsel %vm331_vm0, %v344_v29, -inf }
 0x1af   : > { %349 = vmax.xlane.f32.xlu0 %v348_v30  ;;  %v337_v31 = vpop.xlane.xlu0 %336 }
 0x1b0   : > { %v345_v32 = vsub.f32 %v337_v31, %v317_v19 }
 0x1b2   : > { %v351_v33 = vsel %vm331_vm0, %v345_v32, -inf }
 0x1b3   : > { %v340_v34 = vpop.xlane.xlu1 %339  ;;  %352 = vmax.xlane.f32.xlu1 %v351_v33 }
 0x1b4   : > { %v346_v35 = vsub.f32 %v340_v34, %v322_v22 }
 0x1b6   : > { %v354_v36 = vsel %vm331_vm0, %v346_v35, -inf }
 0x1b7   : > { %355 = vmax.xlane.f32.xlu0 %v354_v36  ;;  %v343_v37 = vpop.xlane.xlu1 %342 }
 0x1b8   : > { %v347_v38 = vsub.f32 %v343_v37, %v327_v25 }
 0x1ba   : > { %v357_v39 = vsel %vm331_vm0, %v347_v38, -inf }
 0x1bb   : > { %358 = vmax.xlane.f32.xlu1 %v357_v39 }
 0x238   : > { %v350_v40 = vpop.xlane.xlu0 %349 }
 0x239   : > { %v360_v41 = vsub.f32 %v344_v29, %v350_v40 }
 0x23b   : > { %v364_v42 = vmul.f32 1.442695, %v360_v41 }
 0x23c   : > { %v353_v43 = vpop.xlane.xlu1 %352 }
 0x23d   : > { %710 = vpow2.f32 %v364_v42  ;;  %v361_v44 = vsub.f32 %v345_v32, %v353_v43 }
 0x23f   : > { %v366_v45 = vmul.f32 1.442695, %v361_v44 }
 0x240   : > { %v356_v46 = vpop.xlane.xlu0 %355 }
 0x241   : > { %712 = vpow2.f32 %v366_v45  ;;  %v362_v47 = vsub.f32 %v346_v35, %v356_v46 }
 0x243   : > { %v368_v48 = vmul.f32 1.442695, %v362_v47 }
 0x244   : > { %v359_v49 = vpop.xlane.xlu1 %358 }
 0x245   : > { %714 = vpow2.f32 %v368_v48  ;;  %v363_v50 = vsub.f32 %v347_v38, %v359_v49 }
 0x247   : > { %v370_v51 = vmul.f32 1.442695, %v363_v50 }
 0x249   : > { %716 = vpow2.f32 %v370_v51 }
 0x24a   : > { %v711_v52 = vpop.eup %710 }
 0x24b   : > { %v372_v53 = vsel %vm331_vm0, %v711_v52, 0.0 }
 0x24c   : > { %373 = vadd.xlane.f32.xlu0 %v372_v53 }
 0x24e   : > { %v713_v54 = vpop.eup %712 }
 0x24f   : > { %v375_v55 = vsel %vm331_vm0, %v713_v54, 0.0 }
 0x250   : > { %376 = vadd.xlane.f32.xlu1 %v375_v55 }
 0x252   : > { %v715_v56 = vpop.eup %714 }
 0x253   : > { %v378_v57 = vsel %vm331_vm0, %v715_v56, 0.0 }
 0x254   : > { %379 = vadd.xlane.f32.xlu0 %v378_v57 }
 0x256   : > { %v717_v58 = vpop.eup %716 }
 0x257   : > { %v381_v59 = vsel %vm331_vm0, %v717_v58, 0.0 }
 0x258   : > { %382 = vadd.xlane.f32.xlu1 %v381_v59 }
 0x2d5   : > { %v374_v61 = vpop.xlane.xlu0 %373 }
 0x2d6   : > { %718 = vrcp.f32 %v374_v61 }
 0x2d9   : > { %v377_v62 = vpop.xlane.xlu1 %376 }
 0x2da   : > { %720 = vrcp.f32 %v377_v62 }
 0x2dd   : > { %v380_v63 = vpop.xlane.xlu0 %379 }
 0x2de   : > { %722 = vrcp.f32 %v380_v63 }
 0x2e1   : > { %v383_v0 = vpop.xlane.xlu1 %382 }
 0x2e2   : > { %724 = vrcp.f32 %v383_v0 }
 0x2e3   : > { %v719_v1 = vpop.eup %718 }
 0x2e4   : > { %v388_v2 = vmul.f32 %v719_v1, %v711_v52 }
 0x2e6   : > { %642 = vmatmul.mubr.msk.f32.vlgmr.msra.gmra.mxu1 %vm331_vm0, %v388_v2 }
 0x2e7   : > { %v721_v4 = vpop.eup %720  ;;  %474 = vmatprep.mubr.f32.mxu1 %v856_v60 }
 0x2e8   : > { %v389_v5 = vmul.f32 %v721_v4, %v713_v54 }
 0x2ea   : > { %643 = vmatmul.mubr.msk.f32.gmra.mxu1 %vm331_vm0, %v389_v5 }
 0x2eb   : > { %v723_v6 = vpop.eup %722  ;;  %480 = vmatprep.mubr.f32.mxu1 %v856_v60 }
 0x2ec   : > { %v390_v7 = vmul.f32 %v723_v6, %v715_v56 }
 0x2ee   : > { %644 = vmatmul.mubr.msk.f32.gmra.mxu1 %vm331_vm0, %v390_v7 }
 0x2ef   : > { %v725_v8 = vpop.eup %724  ;;  %486 = vmatprep.mubr.f32.mxu1 %v856_v60 }
 0x2f0   : > { %v391_v16 = vmul.f32 %v725_v8, %v717_v58 }
 0x2f2   : > { %645 = vmatmul.mubr.msk.f32.gmra.mxu1 %vm331_vm0, %v391_v16 }
 0x3a6   : > { %v470_v18 = vpop.f32.mrf.mxu1 }
 0x3a7   : > { %v495_v19 = vmul.f32 %v494_v17, %v470_v18 }
 0x3a8   : > { %v472_v20 = vpop.f32.mrf.mxu1 }
 0x3a9   : > { %v503_v21 = vadd.f32 %v495_v19, %v1063_v9  ;;  %v496_v22 = vmul.f32 %v494_v17, %v472_v20 }
 0x3aa   : > { %v476_v23 = vpop.f32.mrf.mxu1 }
 0x3ab   : > { %511 = vst [vmem:[%s229_s11] sm:$0xff] %v503_v21  ;;  %v504_v24 = vadd.f32 %v496_v22, %v1059_v3  ;;  %v497_v25 = vmul.f32 %v494_v17, %v476_v23 }
 0x3ac   : > { %v478_v26 = vpop.f32.mrf.mxu1 }
 0x3ad   : > { %512 = vst [vmem:[%s229_s11 + $0x8] sm:$0xff] %v504_v24  ;;  %v505_v27 = vadd.f32 %v497_v25, %v1071_v11  ;;  %v498_v28 = vmul.f32 %v494_v17, %v478_v26 }
 0x3ae   : > { %v482_v29 = vpop.f32.mrf.mxu1 }
 0x3af   : > { %513 = vst [vmem:[%s229_s11 + $0x10] sm:$0xff] %v505_v27  ;;  %v506_v30 = vadd.f32 %v498_v28, %v1066_v10  ;;  %v499_v31 = vmul.f32 %v494_v17, %v482_v29 }
 0x3b0   : > { %v484_v32 = vpop.f32.mrf.mxu1 }
 0x3b1   : > { %514 = vst [vmem:[%s229_s11 + $0x18] sm:$0xff] %v506_v30  ;;  %v507_v9 = vadd.f32 %v499_v31, %v1079_v13  ;;  %v500_v33 = vmul.f32 %v494_v17, %v484_v32 }
 0x3b2   : > { %v488_v3 = vpop.f32.mrf.mxu1 }
 0x3b3   : > { %515 = vst [vmem:[%s229_s11 + $0x20] sm:$0xff] %v507_v9  ;;  %v508_v34 = vadd.f32 %v500_v33, %v1074_v12  ;;  %v501_v35 = vmul.f32 %v494_v17, %v488_v3 }
 0x3b4   : > { %v490_v11 = vpop.f32.mrf.mxu1 }
 0x3b5   : > { %516 = vst [vmem:[%s229_s11 + $0x28] sm:$0xff] %v508_v34  ;;  %v509_v10 = vadd.f32 %v501_v35, %v1087_v15  ;;  %v502_v13 = vmul.f32 %v494_v17, %v490_v11 }
 0x3b7   : > { %517 = vst [vmem:[%s229_s11 + $0x30] sm:$0xff] %v509_v10  ;;  %v510_v12 = vadd.f32 %v502_v13, %v1082_v14 }
 0x3b9   : > { %518 = vst [vmem:[%s229_s11 + $0x38] sm:$0xff] %v510_v12 }
 0x3ba   : > { %795 = shalt.err (!%p792_p4)
}
 0x3bb   : > { %s796_s12 = scalar_lea.hbm %s1120_s28, 1024  ;;  %s800_s9 = scalar_lea.hbm %s1167_s3, 2048 }
 0x3bc   : > { %p797_p9 = scmp.ne.s32.totalorder %s1120_s28, %s796_s12  ;;  %p801_p5 = scmp.lt.s32.totalorder %s1120_s28, %s1167_s3 }
 0x3bd   : > { %p802_p8 = scmp.lt.s32.totalorder %s800_s9, %s796_s12 }
 0x3be   : > { %p798_p11 = pnand %p797_p9, %p1177_p1 }
 0x3bf   : > { %p803_p6 = por %p802_p8, %p801_p5 }
 0x3c0   : > { %p799_p3 = pneg %p798_p11 }
 0x3c2   : > { %p804_p13 = pnand %p803_p6, %p799_p3 }
 0x3c4   : > { %807 = shalt.err (!%p804_p13)
}
 0x3c5   : > { %s858_s10 = smov 256   ;;  %s859_s24 = smov 16  }
 0x3c6   : > { %658 = dma.vmem_to_hbm [thread:$0]  (%p1177_p1), %s1114_s18, 1024, %s1120_s28, %s520_s2, %s858_s10, %s858_s10, %s859_s24  }
 0x3c7 PF: > { %s548_s11 = sand.u32 1, %s838_s14   ;;  %p1178_p12 = scmp.ne.s32.totalorder %s1173_s26, 0 }
 0x3c8   : > { %p1179_p7 = scmp.ge.s32.totalorder %s850_s17, 2  ;;  %s549_s21 = scalar_lea.sflag [#allocation5], %s548_s11 }
 0x3ca   : > { %p668_p10 = pnand %p1179_p7, %p1178_p12 }
 0x3cc   : > { %p669_p0 = pneg %p668_p10 }
 0x3ce   : > { %833 = dma.done.wait (%p669_p0), %s549_s21, 1024  }
 0x3cf   : > { %835 = vsyncadd (%p669_p0), %s549_s21, 4294966272  ;;  %p20_p2 = scmp.ge.s32.totalorder %s908_s19, 4   ;;  %s1180_s14 = smov %s842_s15 }
 0x3d0   : > { %s1181_s15 = smov %s846_s16  ;;  %s1182_s16 = smov %s920_s22 }
 0x3d1   : > { %s1183_s17 = smov %s908_s19  ;;  %22 = sbr.rel (!%p20_p2) target bundleno = 9 (0x9), region = 90 }
 0x3d6   :  { %554 = vsyncpa [#allocation4], 1 }
 0x3d7   :  { %556 = vsyncpa [#allocation4 + $0x1], 1 }
 0x3d8   :  { %557 = vsyncpa [#allocation7], 1 }
 0x3d9   :  { %559 = vsyncpa [#allocation7 + $0x1], 1 }
 0x3da   :  { %560 = vsyncpa [#allocation5], 1 }
 0x3db   :  { %562 = vsyncpa [#allocation5 + $0x1], 1 }

</bundles_post_ra>
